<compile_context>
chip_gen: v7x
topology: tpu7x:2x2x1
jax: 0.10.0
libtpu: 0.0.40
codegen_flags: <defaults>
</compile_context>

<pallas_src>
import functools
import math

import jax
import jax.numpy as jnp
import numpy as np
from jax import lax
from jax.experimental import pallas as pl
from jax.experimental.pallas import tpu as pltpu


# ---------------------------------------------------------------------------
# Pallas kernel: Bt samples per grid step
# ---------------------------------------------------------------------------
def _adaconv_kernel(x_ref, w_ref, o_ref, patches_ref, *, bt, ksize, w_stride,
                    cin_pad, kkc, out_len, unroll):
    """out(Cout, Lo) = W_aug(Cout, C) @ patches(C, Lo); bias folded as an all-ones row."""
    # Bias row (+ zero-weight filler rows) of the im2col matrix.  Written every grid
    # step (scratch is per-core; do NOT guard with program_id==0 under "parallel").
    patches_ref[kkc:, :] = jnp.ones(
        (patches_ref.shape[0] - kkc, out_len), patches_ref.dtype)

    def body(i, carry):
        x = x_ref[i]                                       # (Cin_pad, Lx) bf16
        # im2col: K*K taps, each an 8-sublane-aligned store into the VMEM scratch.
        for dy in range(ksize):
            for dx in range(ksize):
                off = dy * w_stride + dx                   # static lane offset
                tap = x[:, off:off + out_len]              # (Cin_pad, Lo)
                t0 = (dy * ksize + dx) * cin_pad
                patches_ref[t0:t0 + cin_pad, :] = tap
        acc = jnp.dot(w_ref[i], patches_ref[...],
                      preferred_element_type=jnp.float32)  # (Cout, Lo) f32
        o_ref[i] = acc.astype(o_ref.dtype)                 # lane-dense (Lo % 128 == 0)
        return carry

    if bt == 1:
        body(0, 0)
    else:
        lax.fori_loop(0, bt, body, 0, unroll=unroll)


# ---------------------------------------------------------------------------
# Wrapper: layout plumbing + pallas_call
# ---------------------------------------------------------------------------
def adaconv2d_forward(inputs, weight, bias=None, *, kernel_size=3, stride=1,
                      padding=1, dilation=1, groups=1, samples_per_step=None):
    # TODO(synk): stride != 1, dilation != 1 and groups != 1 conv configs are not
    # implemented (module defaults are 3/1/1/1/1); kernel_size=1 with padding=0
    # covers the module's 1x1 bmm fast path.
    assert stride == 1 and dilation == 1 and groups == 1
    B, Cin, H, W = inputs.shape
    _, Cout, Cin_w, KH, KW = weight.shape
    K = kernel_size
    assert Cin_w == Cin and KH == K and KW == K

    Hp, Wp = H + 2 * padding, W + 2 * padding
    Ho, Wo = Hp - K + 1, Wp - K + 1

    # Pad the image width so Lo = Ho * W_stride is a multiple of 128 -> unmasked stores.
    lane_step = 128 // math.gcd(Ho, 128)
    W_stride = ((Wp + lane_step - 1) // lane_step) * lane_step
    Lo = Ho * W_stride

    # Pad channels to a full 8-sublane tile; +1 all-ones contraction row folds the bias.
    Cin_pad = ((Cin + 7) // 8) * 8
    KKC = K * K * Cin_pad
    C_dim = ((KKC + 1 + 7) // 8) * 8

    # Single pad + reshape + cast for the input: conv padding, width pad to W_stride,
    # extra bottom row(s) so the last tap slice stays in bounds, channel pad to Cin_pad.
    extra_rows = -(-(K - 1) // W_stride)            # 1 if K > 1 else 0
    xp = jnp.pad(inputs,
                 ((0, 0), (0, Cin_pad - Cin),
                  (padding, padding + extra_rows),
                  (padding, W_stride - W - padding)))
    Lx = (Hp + extra_rows) * W_stride
    x_flat = xp.reshape(B, Cin_pad, Lx).astype(jnp.bfloat16)

    # Weight (B, Cout, Cin, K, K) -> (B, Cout, C_dim) in (dy, dx, ci) order, with the
    # bias appended as contraction column KKC (its im2col row is all ones).
    w_t = jnp.transpose(weight, (0, 1, 3, 4, 2))
    w_t = jnp.pad(w_t, ((0, 0), (0, 0), (0, 0), (0, 0), (0, Cin_pad - Cin)))
    w_flat = w_t.reshape(B, Cout, KKC)
    if bias is None:
        bias = jnp.zeros((B, Cout), inputs.dtype)
    w_aug = jnp.concatenate(
        [w_flat, bias.reshape(B, Cout, 1).astype(w_flat.dtype),
         jnp.zeros((B, Cout, C_dim - KKC - 1), w_flat.dtype)],
        axis=-1).astype(jnp.bfloat16)

    # Samples per grid step: amortize the per-step fixed cost, but keep the grid
    # length >= 2 so ("parallel",) still feeds both v7x TensorCores.
    if samples_per_step is None:
        samples_per_step = 1
        for cand in range(1, min(8, B) + 1):
            if B % cand == 0 and B // cand >= 2:
                samples_per_step = cand
    Bt = samples_per_step
    assert B % Bt == 0

    kernel = functools.partial(
        _adaconv_kernel, bt=Bt, ksize=K, w_stride=W_stride, cin_pad=Cin_pad,
        kkc=KKC, out_len=Lo, unroll=(Bt <= 4))

    flops = 2 * B * Cout * C_dim * Lo
    bytes_accessed = x_flat.size * 2 + w_aug.size * 2 + B * Cout * Lo * 4

    # TODO(synk): for large H*W add a second grid axis over output-row tiles (halo of
    # K-1 rows); derive the tile size against v7x's 64 MiB VMEM (not v6e's 128 MiB).
    # If xprof shows exposed DMA after Bt-batching, add pipeline_mode=pl.Buffered(3)
    # to the x input spec.
    out_flat = pl.pallas_call(
        kernel,
        out_shape=jax.ShapeDtypeStruct((B, Cout, Lo), jnp.float32),
        grid=(B // Bt,),
        in_specs=[
            pl.BlockSpec((Bt, Cin_pad, Lx), lambda g: (g, 0, 0)),
            pl.BlockSpec((Bt, Cout, C_dim), lambda g: (g, 0, 0)),
        ],
        out_specs=pl.BlockSpec((Bt, Cout, Lo), lambda g: (g, 0, 0)),
        scratch_shapes=[pltpu.VMEM((C_dim, Lo), jnp.bfloat16)],
        compiler_params=pltpu.CompilerParams(
            dimension_semantics=("parallel",),
            vmem_limit_bytes=64 * 1024 * 1024),
        cost_estimate=pl.CostEstimate(flops=flops, transcendentals=0,
                                      bytes_accessed=bytes_accessed),
    )(x_flat, w_aug)

    # Contiguous reshape is free; only the [..., :Wo] slice remains (consumers that can
    # handle the W_stride-padded slab should take out_flat directly and skip it).
    return out_flat.reshape(B, Cout, Ho, W_stride)[..., :Wo]


# ---------------------------------------------------------------------------
# Pure-JAX reference (per-sample conv2d, full f32 precision)
# ---------------------------------------------------------------------------
def adaconv2d_ref(inputs, weight, bias, *, padding=1):
    outs = []
    for i in range(inputs.shape[0]):
        w_hwio = jnp.transpose(weight[i], (2, 3, 1, 0))
        y = jax.lax.conv_general_dilated(
            inputs[i:i + 1], w_hwio, (1, 1),
            [(padding, padding), (padding, padding)],
            dimension_numbers=("NCHW", "HWIO", "NCHW"),
            precision=jax.lax.Precision.HIGHEST)
        outs.append(y[0] + bias[i][:, None, None])
    return jnp.stack(outs, axis=0)


# ---------------------------------------------------------------------------
if __name__ == "__main__":
    # AdaConv2d(in_channels=4, out_channels=8, kernel_size=3, padding=1, bias=True)
    B, Cin, Cout, H, W = 2, 4, 8, 16, 16
    K, PAD = 3, 1

    key = jax.random.PRNGKey(0)
    k1, k2, k3 = jax.random.split(key, 3)
    x = jax.random.normal(k1, (B, Cin, H, W), dtype=jnp.float32)
    w = jax.random.normal(k2, (B, Cout, Cin, K, K), jnp.float32) / np.sqrt(Cin * K * K)
    b = jax.random.uniform(k3, (B, Cout), jnp.float32, -0.1, 0.1)

    fwd = jax.jit(functools.partial(adaconv2d_forward, kernel_size=K, padding=PAD))
    out = jax.block_until_ready(fwd(x, w, b))
    assert out.shape == (B, Cout, H, W) and out.dtype == jnp.float32

    ref = adaconv2d_ref(x, w, b, padding=PAD)
    # Note: MXU operands are bf16 (f32 accumulation), so results differ slightly from
    # the f32 PyTorch reference; tolerance reflects that.
    np.testing.assert_allclose(np.asarray(out), np.asarray(ref), rtol=2e-2, atol=2e-2)

    print("KERNEL_OK")
</pallas_src>

<mosaic_0001>
module attributes {stable_mosaic.version = 11 : i64} {
  func.func @_adaconv_kernel(%arg0: i32, %arg1: memref<1x8x456xbf16, #tpu.memory_space<vmem>>, %arg2: memref<1x8x80xbf16, #tpu.memory_space<vmem>>, %arg3: memref<1x8x384xf32, #tpu.memory_space<vmem>>, %arg4: memref<80x384xbf16, #tpu.memory_space<vmem>>) attributes {dimension_semantics = [#tpu.dimension_semantics<parallel>], iteration_bounds = array<i64: 2>, scalar_prefetch = 0 : i64, scratch_operands = 1 : i64, tpu.core_type = #tpu.core_type<tc>, window_params = [{transform_indices = @transform_0, window_bounds = array<i64: 1, 8, 456>}, {transform_indices = @transform_1, window_bounds = array<i64: 1, 8, 80>}, {transform_indices = @transform_2, window_bounds = array<i64: 1, 8, 384>}]} {
    %cst = arith.constant 1.000000e+00 : bf16
    %0 = vector.broadcast %cst : bf16 to vector<8x384xbf16>
    %c72 = arith.constant 72 : index
    %c0 = arith.constant 0 : index
    %1 = vector.load %arg4[%c72, %c0] : memref<80x384xbf16, #tpu.memory_space<vmem>>, vector<8x384xbf16>
    tpu.vector_store %arg4[%c72, %c0], %0 {strides = array<i32>} : memref<80x384xbf16, #tpu.memory_space<vmem>>, vector<8x384xbf16>,
    %c0_0 = arith.constant 0 : index
    %c0_1 = arith.constant 0 : index
    %c0_2 = arith.constant 0 : index
    %2 = vector.load %arg1[%c0_0, %c0_1, %c0_2] : memref<1x8x456xbf16, #tpu.memory_space<vmem>>, vector<1x8x456xbf16>
    %3 = vector.shape_cast %2 : vector<1x8x456xbf16> to vector<8x456xbf16>
    %4 = vector.extract_strided_slice %3 {offsets = [0, 0], sizes = [8, 384], strides = [1, 1]} : vector<8x456xbf16> to vector<8x384xbf16>
    %c0_3 = arith.constant 0 : index
    %c0_4 = arith.constant 0 : index
    %5 = vector.load %arg4[%c0_3, %c0_4] : memref<80x384xbf16, #tpu.memory_space<vmem>>, vector<8x384xbf16>
    tpu.vector_store %arg4[%c0_3, %c0_4], %4 {strides = array<i32>} : memref<80x384xbf16, #tpu.memory_space<vmem>>, vector<8x384xbf16>,
    %6 = vector.extract_strided_slice %3 {offsets = [0, 1], sizes = [8, 384], strides = [1, 1]} : vector<8x456xbf16> to vector<8x384xbf16>
    %c8 = arith.constant 8 : index
    %c0_5 = arith.constant 0 : index
    %7 = vector.load %arg4[%c8, %c0_5] : memref<80x384xbf16, #tpu.memory_space<vmem>>, vector<8x384xbf16>
    tpu.vector_store %arg4[%c8, %c0_5], %6 {strides = array<i32>} : memref<80x384xbf16, #tpu.memory_space<vmem>>, vector<8x384xbf16>,
    %8 = vector.extract_strided_slice %3 {offsets = [0, 2], sizes = [8, 384], strides = [1, 1]} : vector<8x456xbf16> to vector<8x384xbf16>
    %c16 = arith.constant 16 : index
    %c0_6 = arith.constant 0 : index
    %9 = vector.load %arg4[%c16, %c0_6] : memref<80x384xbf16, #tpu.memory_space<vmem>>, vector<8x384xbf16>
    tpu.vector_store %arg4[%c16, %c0_6], %8 {strides = array<i32>} : memref<80x384xbf16, #tpu.memory_space<vmem>>, vector<8x384xbf16>,
    %10 = vector.extract_strided_slice %3 {offsets = [0, 24], sizes = [8, 384], strides = [1, 1]} : vector<8x456xbf16> to vector<8x384xbf16>
    %c24 = arith.constant 24 : index
    %c0_7 = arith.constant 0 : index
    %11 = vector.load %arg4[%c24, %c0_7] : memref<80x384xbf16, #tpu.memory_space<vmem>>, vector<8x384xbf16>
    tpu.vector_store %arg4[%c24, %c0_7], %10 {strides = array<i32>} : memref<80x384xbf16, #tpu.memory_space<vmem>>, vector<8x384xbf16>,
    %12 = vector.extract_strided_slice %3 {offsets = [0, 25], sizes = [8, 384], strides = [1, 1]} : vector<8x456xbf16> to vector<8x384xbf16>
    %c32 = arith.constant 32 : index
    %c0_8 = arith.constant 0 : index
    %13 = vector.load %arg4[%c32, %c0_8] : memref<80x384xbf16, #tpu.memory_space<vmem>>, vector<8x384xbf16>
    tpu.vector_store %arg4[%c32, %c0_8], %12 {strides = array<i32>} : memref<80x384xbf16, #tpu.memory_space<vmem>>, vector<8x384xbf16>,
    %14 = vector.extract_strided_slice %3 {offsets = [0, 26], sizes = [8, 384], strides = [1, 1]} : vector<8x456xbf16> to vector<8x384xbf16>
    %c40 = arith.constant 40 : index
    %c0_9 = arith.constant 0 : index
    %15 = vector.load %arg4[%c40, %c0_9] : memref<80x384xbf16, #tpu.memory_space<vmem>>, vector<8x384xbf16>
    tpu.vector_store %arg4[%c40, %c0_9], %14 {strides = array<i32>} : memref<80x384xbf16, #tpu.memory_space<vmem>>, vector<8x384xbf16>,
    %16 = vector.extract_strided_slice %3 {offsets = [0, 48], sizes = [8, 384], strides = [1, 1]} : vector<8x456xbf16> to vector<8x384xbf16>
    %c48 = arith.constant 48 : index
    %c0_10 = arith.constant 0 : index
    %17 = vector.load %arg4[%c48, %c0_10] : memref<80x384xbf16, #tpu.memory_space<vmem>>, vector<8x384xbf16>
    tpu.vector_store %arg4[%c48, %c0_10], %16 {strides = array<i32>} : memref<80x384xbf16, #tpu.memory_space<vmem>>, vector<8x384xbf16>,
    %18 = vector.extract_strided_slice %3 {offsets = [0, 49], sizes = [8, 384], strides = [1, 1]} : vector<8x456xbf16> to vector<8x384xbf16>
    %c56 = arith.constant 56 : index
    %c0_11 = arith.constant 0 : index
    %19 = vector.load %arg4[%c56, %c0_11] : memref<80x384xbf16, #tpu.memory_space<vmem>>, vector<8x384xbf16>
    tpu.vector_store %arg4[%c56, %c0_11], %18 {strides = array<i32>} : memref<80x384xbf16, #tpu.memory_space<vmem>>, vector<8x384xbf16>,
    %20 = vector.extract_strided_slice %3 {offsets = [0, 50], sizes = [8, 384], strides = [1, 1]} : vector<8x456xbf16> to vector<8x384xbf16>
    %c64 = arith.constant 64 : index
    %c0_12 = arith.constant 0 : index
    %21 = vector.load %arg4[%c64, %c0_12] : memref<80x384xbf16, #tpu.memory_space<vmem>>, vector<8x384xbf16>
    tpu.vector_store %arg4[%c64, %c0_12], %20 {strides = array<i32>} : memref<80x384xbf16, #tpu.memory_space<vmem>>, vector<8x384xbf16>,
    %c0_13 = arith.constant 0 : index
    %c0_14 = arith.constant 0 : index
    %c0_15 = arith.constant 0 : index
    %22 = vector.load %arg2[%c0_13, %c0_14, %c0_15] : memref<1x8x80xbf16, #tpu.memory_space<vmem>>, vector<1x8x80xbf16>
    %23 = vector.shape_cast %22 : vector<1x8x80xbf16> to vector<8x80xbf16>
    %c0_16 = arith.constant 0 : index
    %c0_17 = arith.constant 0 : index
    %24 = vector.load %arg4[%c0_16, %c0_17] : memref<80x384xbf16, #tpu.memory_space<vmem>>, vector<80x384xbf16>
    %cst_18 = arith.constant dense<0.000000e+00> : vector<8x384xf32>
    %25 = tpu.matmul %23, %24, %cst_18 {dimension_numbers = #tpu.dot_dimension_numbers<[1], [0], [0], [1], [0, 0, 1, 1], [], []>} : vector<8x80xbf16>, vector<80x384xbf16>, vector<8x384xf32> -> vector<8x384xf32>
    %c0_19 = arith.constant 0 : index
    %c0_20 = arith.constant 0 : index
    %c0_21 = arith.constant 0 : index
    %26 = vector.load %arg3[%c0_19, %c0_20, %c0_21] : memref<1x8x384xf32, #tpu.memory_space<vmem>>, vector<1x8x384xf32>
    %27 = vector.shape_cast %26 : vector<1x8x384xf32> to vector<8x384xf32>
    %28 = vector.shape_cast %25 : vector<8x384xf32> to vector<1x8x384xf32>
    tpu.vector_store %arg3[%c0_19, %c0_20, %c0_21], %28 {strides = array<i32>} : memref<1x8x384xf32, #tpu.memory_space<vmem>>, vector<1x8x384xf32>,
    return
  }
  func.func @transform_0(%arg0: i32) -> (i32, i32, i32) {
    %c0_i32 = arith.constant 0 : i32
    %c0_i32_0 = arith.constant 0 : i32
    %c0_i32_1 = arith.constant 0 : i32
    return %arg0, %c0_i32, %c0_i32_0 : i32, i32, i32
  }
  func.func @transform_1(%arg0: i32) -> (i32, i32, i32) {
    %c0_i32 = arith.constant 0 : i32
    %c0_i32_0 = arith.constant 0 : i32
    %c0_i32_1 = arith.constant 0 : i32
    return %arg0, %c0_i32, %c0_i32_0 : i32, i32, i32
  }
  func.func @transform_2(%arg0: i32) -> (i32, i32, i32) {
    %c0_i32 = arith.constant 0 : i32
    %c0_i32_0 = arith.constant 0 : i32
    %c0_i32_1 = arith.constant 0 : i32
    return %arg0, %c0_i32, %c0_i32_0 : i32, i32, i32
  }
}

</mosaic_0001>

<bundles_post_ra>
// kernel: adaconv2d_forward.1
= control target key start
LH: loop header
LB: loop body
LE: loop exit
PB: predicated region body
PF: predicated region fallthrough
CT: control target
= control target key end

     0   :  { %7 = vsyncpa [#allocation4], 0  ;;  %s1082_s0 = inlined_call_operand.hbm [shape: bf16[2,8,456], index: 0, kind: input, shape index: {}]   ;;  %s1083_s1 = inlined_call_operand.hbm [shape: bf16[2,8,80], index: 1, kind: input, shape index: {}]   ;;  %s1084_s2 = inlined_call_operand.hbm [shape: f32[2,8,384], index: 2, kind: output, shape index: {}]  }
   0x1   :  { %9 = vsyncpa [#allocation4 + $0x1], 0 }
   0x2   :  { %10 = vsyncpa [#allocation7], 0 }
   0x3   :  { %12 = vsyncpa [#allocation7 + $0x1], 0 }
   0x4   :  { %13 = vsyncpa [#allocation5], 0 }
   0x5   :  { %15 = vsyncpa [#allocation5 + $0x1], 0  ;;  %s848_s9 = smov 0   ;;  %s850_s10 = smov 0  }
   0x6   :  { %s852_s11 = smov 0   ;;  %s854_s12 = smov 0  }
   0x7 LB: > { %s869_s13 = sadd.s32 4294967295, %s816_s12   ;;  %s576_s14 = sadd.s32 4294967294, %s816_s12   ;;  %s816_s12 = sphi %s854_s12, %s1103_s12   ;;  %s812_s11 = sphi %s852_s11, %s1102_s11   ;;  %s808_s10 = sphi %s850_s10, %s1101_s10   ;;  %s804_s9 = sphi %s848_s9, %s1100_s9  }
   0x8   : > { %s873_s15 = sadd.s32 1, %s816_s12   ;;  %s28_s16 = sadd.s32 1, %s812_s11 }
   0x9   : > { %s25_s17 = ssub.s32 %s816_s12, %s873_s15  ;;  %p35_p0 = scmp.ne.s32.totalorder %s812_s11, %s808_s10 }
   0xa   : > { %p26_p1 = scmp.eq.s32.totalorder %s25_s17, 0  ;;  %p36_p2 = scmp.eq.s32.totalorder %s816_s12, 0 }
   0xb   : > { %p41_p3 = scmp.ne.s32.totalorder %s808_s10, %s804_s9  ;;  %p42_p4 = scmp.eq.s32.totalorder %s869_s13, 0 }
   0xc   : > { %s885_s18 = scalar_select %p26_p1, %s812_s11, %s28_s16  }
   0xd   : > { %p887_p5 = por %p36_p2, %p35_p0  ;;  %p891_p6 = por %p42_p4, %p41_p3 }
   0xe   : > { %p91_p7 = scmp.eq.s32.totalorder %s869_s13, 1  ;;  %p97_p8 = scmp.eq.s32.totalorder %s576_s14, 1 }
   0xf   : > { %s1088_s20 = scalar_select %p891_p6, 1, 0 }
  0x10   : > { %p636_p10 = scmp.lt.s32.totalorder %s816_s12, 2  ;;  %p898_p11 = por %p91_p7, %p35_p0 }
  0x11   : > { %p902_p12 = por %p97_p8, %p41_p3  ;;  %s907_s23 = sand.u32 1, %s812_s11  }
  0x12   : > { %s1089_s21 = scalar_select %p898_p11, 1, 0 }
  0x13   : > { %s1090_s22 = scalar_select %p902_p12, 1, 0 }
  0x14   : > { %s596_s24 = sshll.u32 %s816_s12, 8  ;;  %s579_s25 = sshll.u32 %s907_s23, 4 }
  0x15   : > { %s914_s28 = scalar_lea.hbm %s1082_s0, %s596_s24  ;;  %s121_s29 = scalar_lea.vmem [#allocation3], %s579_s25 }
  0x16   : > { %s129_s30 = sshll.u32 %s121_s29, 4  ;;  %p918_p13 = pnand %p636_p10, %p887_p5  ;;  %s922_s30 = int_to_ptr.vmem [resolvable:$true] %s129_s30 }
  0x17   : > { %s118_s4 = scalar_lea.sflag [#allocation4], %s907_s23  ;;  %s686_s5 = scalar_lea.hbm %s914_s28, 256 }
  0x18   : > { %p687_p2 = scmp.ne.s32.totalorder %s914_s28, %s686_s5  ;;  %p688_p3 = pneg %p918_p13 }
  0x19   : > { %s691_s8 = scalar_lea.hbm %s1082_s0, 512  ;;  %p692_p5 = scmp.lt.u32.totalorder %s914_s28, %s1082_s0 }
  0x1a   : > { %p689_p4 = pnand %p688_p3, %p687_p2  ;;  %p693_p8 = scmp.lt.u32.totalorder %s691_s8, %s686_s5 }
  0x1b   : > { %p695_p9 = scmp.lt.u32.totalorder %s686_s5, %s914_s28 }
  0x1c   : > { %p690_p7 = pneg %p689_p4  ;;  %p694_p10 = por %p693_p8, %p692_p5 }
  0x1e   : > { %p696_p0 = por %p695_p9, %p694_p10 }
  0x20   : > { %p697_p1 = pnand %p696_p0, %p690_p7 }
  0x22   : > { %700 = shalt.err (!%p697_p1)
}
  0x23   : > { %s701_s17 = scalar_lea.vmem %s922_s30, 256  ;;  %s818_s19 = smov [#allocation3]  }
  0x24   : > { %p702_p2 = scmp.ne.s32.totalorder %s922_s30, %s701_s17  ;;  %s706_s24 = sshll.u32 %s818_s19, 4  ;;  %s707_s24 = int_to_ptr.vmem [resolvable:$false] %s706_s24 }
  0x25   : > { %s708_s25 = scalar_lea.vmem %s707_s24, 512  ;;  %p709_p11 = scmp.lt.s32.totalorder %s922_s30, %s707_s24 }
  0x26   : > { %p704_p4 = pnand %p702_p2, %p688_p3  ;;  %p710_p5 = scmp.lt.s32.totalorder %s708_s25, %s701_s17 }
  0x28   : > { %p705_p12 = pneg %p704_p4  ;;  %p711_p8 = por %p710_p5, %p709_p11 }
  0x2a   : > { %p712_p9 = pnand %p711_p8, %p705_p12 }
  0x2c   : > { %715 = shalt.err (!%p712_p9)
}
  0x2d   : > { %628 = dma.hbm_to_vmem [thread:$0]  (!%p918_p13), %s914_s28, 256, %s922_s30, %s118_s4  }
  0x2e   : > { %p1092_p0 = scmp.lt.s32.totalorder %s816_s12, 3  ;;  %p1093_p1 = scmp.ge.s32.totalorder %s816_s12, 1 }
  0x2f   : > { %s582_s27 = sshll.u32 %s907_s23, 2  ;;  %s583_s29 = sshll.u32 %s816_s12, 6 }
  0x30   : > { %p956_p7 = pnand %p1093_p1, %p1092_p0  ;;  %s965_s7 = scalar_lea.hbm %s1083_s1, %s583_s29 }
  0x31   : > { %s140_s8 = scalar_lea.vmem [#allocation6], %s582_s27  ;;  %s137_s28 = scalar_lea.sflag [#allocation7], %s907_s23 }
  0x32   : > { %s1094_s26 = scalar_select %p956_p7, 1, 0 }
  0x33   : > { %s147_s14 = sshll.u32 %s140_s8, 4  ;;  %s716_s30 = scalar_lea.hbm %s965_s7, 64  ;;  %s148_s14 = int_to_ptr.vmem [resolvable:$true] %s147_s14 }
  0x34   : > { %p717_p11 = scmp.ne.s32.totalorder %s965_s7, %s716_s30  ;;  %s721_s17 = scalar_lea.hbm %s1083_s1, 128 }
  0x35   : > { %p722_p2 = scmp.lt.u32.totalorder %s965_s7, %s1083_s1  ;;  %p723_p4 = scmp.lt.u32.totalorder %s721_s17, %s716_s30 }
  0x36   : > { %p719_p12 = pnand %p717_p11, %p688_p3  ;;  %p725_p8 = scmp.lt.u32.totalorder %s716_s30, %s965_s7 }
  0x37   : > { %p724_p5 = por %p723_p4, %p722_p2 }
  0x38   : > { %p720_p10 = pneg %p719_p12 }
  0x39   : > { %p726_p9 = por %p725_p8, %p724_p5 }
  0x3b   : > { %p727_p0 = pnand %p726_p9, %p720_p10 }
  0x3d   : > { %730 = shalt.err (!%p727_p0)
}
  0x3e   : > { %s731_s23 = scalar_lea.vmem %s148_s14, 64  ;;  %s819_s25 = smov [#allocation6]  }
  0x3f   : > { %p732_p1 = scmp.ne.s32.totalorder %s148_s14, %s731_s23  ;;  %s736_s27 = sshll.u32 %s819_s25, 4  ;;  %s737_s27 = int_to_ptr.vmem [resolvable:$false] %s736_s27 }
  0x40   : > { %s738_s29 = scalar_lea.vmem %s737_s27, 128  ;;  %p739_p6 = scmp.lt.s32.totalorder %s148_s14, %s737_s27 }
  0x41   : > { %p734_p11 = pnand %p732_p1, %p688_p3  ;;  %p740_p7 = scmp.lt.s32.totalorder %s738_s29, %s731_s23 }
  0x43   : > { %p735_p12 = pneg %p734_p11  ;;  %p741_p2 = por %p740_p7, %p739_p6 }
  0x45   : > { %p742_p4 = pnand %p741_p2, %p735_p12 }
  0x47   : > { %745 = shalt.err (!%p742_p4)
}
  0x48   : > { %631 = dma.hbm_to_vmem [thread:$0]  (!%p918_p13), %s965_s7, 64, %s148_s14, %s137_s28  }
  0x49   : > { %p1095_p10 = scmp.ne.s32.totalorder %s1094_s26, 0 }
  0x4a   : > { %s990_s5 = sand.u32 (!%p1095_p10), 1, %s808_s10   ;;  %p1096_p3 = scmp.ne.s32.totalorder (!%p1095_p10), %s1088_s20, 0 }
  0x4b   : > { %156 = sbr.rel (%p1095_p10) target bundleno = 504 (0x1f8), region = 28  ;;  %s585_s6 = sshll.u32 (!%p1095_p10), %s990_s5, 4 }
  0x4c   : > { %s159_s8 = scalar_lea.sflag (!%p1095_p10), [#allocation4], %s990_s5  ;;  %s162_s30 = scalar_lea.vmem (!%p1095_p10), [#allocation3], %s585_s6 }
  0x52   : > { %791 = dma.done.wait (%p1096_p3), %s159_s8, 256  }
  0x53   : > { %793 = vsyncadd (%p1096_p3), %s159_s8, 4294967040  ;;  %s586_s3 = sshll.u32 %s990_s5, 2  ;;  %s168_s26 = scalar_lea.sflag [#allocation7], %s990_s5 }
  0x54   : > { %s1000_s7 = scalar_lea.vmem [#allocation6], %s586_s3 }
  0x55   : > { %795 = dma.done.wait (%p1096_p3), %s168_s26, 64  }
  0x56   : > { %797 = vsyncadd (%p1096_p3), %s168_s26, 4294967232  ;;  %v202_v0 = vld [vmem:[%s162_s30] sm:$0xff]  ;;  %v203_v1 = vld [vmem:[%s162_s30 + $0x8] sm:$0xff]  ;;  %s820_s14 = smov 127   ;;  %v821_v6 = vmov 0.0   ;;  %s822_s28 = smov 126  }
  0x57   : > { %v588_v2 = vcombine.high %v202_v0, %v202_v0  ;;  %v587_v3 = vcombine.low %v202_v0, %v202_v0  ;;  %v589_v4 = vcombine.low %v203_v1, %v203_v1  ;;  %v590_v5 = vcombine.high %v203_v1, %v203_v1  ;;  %603 = vmatprep.subr.bf16.mxu1 %v821_v6  ;;  %s823_s20 = smov 104   ;;  %s824_s4 = smov 103  }
  0x58   : > { %s825_s16 = smov 102   ;;  %s826_s17 = smov 80   ;;  %v828_v7 = vmov 1065369472   ;;  %v830_v8 = vmov 0   ;;  %vm831_vm0 = vmmov 0  }
  0x59   : > { %222 = vrot.lane.b32.xlu0 %v588_v2, %s820_s14  ;;  %216 = vst [vmem:[#allocation2 + $0x8] sm:$0xf] %v588_v2  ;;  %220 = vrot.lane.b32.xlu1 %v587_v3, %s820_s14  ;;  %215 = vst [vmem:[#allocation2] sm:$0xf] %v587_v3  ;;  %s827_s19 = smov 79   ;;  %s829_s24 = smov 78  }
  0x5a   : > { %217 = vst [vmem:[#allocation2 + $0x10] sm:$0xf] %v589_v4  ;;  %200 = vst [vmem:[#allocation2 + $0x68] sm:$0xf0] %v828_v7  ;;  %416 = vmatprep.mubr.bf16.mxu0 %v830_v8  ;;  %613 = vmatprep.mubr.msk.bf16.mxu1 %vm831_vm0, %v821_v6  ;;  %vm228_vm1 = vcmask 1039360   ;;  %vm246_vm2 = vcmask 1031168  }
  0x5b   : > { %199 = vst [vmem:[#allocation2 + $0x60] sm:$0xf0] %v828_v7  ;;  %201 = vst [vmem:[#allocation2 + $0x70] sm:$0xf0] %v828_v7  ;;  %vm264_vm3 = vcmask 850944   ;;  %vm282_vm4 = vcmask 842752  }
  0x5c   : > { %vm300_vm5 = vcmask 834560   ;;  %vm318_vm6 = vcmask 654336   ;;  %vm336_vm7 = vcmask 646144   ;;  %vm354_vm8 = vcmask 637952   ;;  %s617_s23 = smul.u32 24, %s990_s5  ;;  %p1097_p13 = scmp.ne.s32.totalorder %s1089_s21, 0 }
  0x5d   : > { %224 = vrot.lane.b32.xlu0 %v589_v4, %s820_s14  ;;  %226 = vrot.lane.b32.xlu1 %v590_v5, %s820_s14  ;;  %s618_s29 = smul.u32 384, %s869_s13  ;;  %s469_s13 = scalar_lea.sflag [#allocation5], %s990_s5 }
  0x5e   : > { %s196_s25 = scalar_lea.vmem [#allocation8], %s617_s23  ;;  %s832_s26 = smov [#allocation8]  }
  0x5f   : > { %s483_s27 = sshll.u32 %s196_s25, 4  ;;  %s1040_s30 = scalar_lea.hbm %s1084_s2, %s618_s29  ;;  %s1035_s27 = int_to_ptr.vmem [resolvable:$true] %s483_s27 }
  0x60   : > { %s746_s3 = scalar_lea.vmem %s1035_s27, 384 }
  0x61   : > { %240 = vrot.lane.b32.xlu0 %v588_v2, %s822_s28  ;;  %242 = vrot.lane.b32.xlu1 %v589_v4, %s822_s28  ;;  %p747_p6 = scmp.ne.s32.totalorder %s1035_s27, %s746_s3 }
  0x63   : > { %p748_p7 = pnand %p747_p6, %p1097_p13 }
  0x65   : > { %258 = vrot.lane.b32.xlu0 %v588_v2, %s823_s20  ;;  %260 = vrot.lane.b32.xlu1 %v589_v4, %s823_s20  ;;  %p749_p5 = pneg %p748_p7 }
  0x69   : > { %238 = vrot.lane.b32.xlu0 %v587_v3, %s822_s28  ;;  %244 = vrot.lane.b32.xlu1 %v590_v5, %s822_s28 }
  0x6d   : > { %256 = vrot.lane.b32.xlu0 %v587_v3, %s823_s20  ;;  %262 = vrot.lane.b32.xlu1 %v590_v5, %s823_s20 }
  0x71   : > { %276 = vrot.lane.b32.xlu0 %v588_v2, %s824_s4  ;;  %278 = vrot.lane.b32.xlu1 %v589_v4, %s824_s4 }
  0x75   : > { %294 = vrot.lane.b32.xlu0 %v588_v2, %s825_s16  ;;  %296 = vrot.lane.b32.xlu1 %v589_v4, %s825_s16 }
  0x79   : > { %274 = vrot.lane.b32.xlu0 %v587_v3, %s824_s4  ;;  %280 = vrot.lane.b32.xlu1 %v590_v5, %s824_s4 }
  0x7d   : > { %292 = vrot.lane.b32.xlu0 %v587_v3, %s825_s16  ;;  %298 = vrot.lane.b32.xlu1 %v590_v5, %s825_s16 }
  0x81   : > { %312 = vrot.lane.b32.xlu0 %v588_v2, %s826_s17  ;;  %314 = vrot.lane.b32.xlu1 %v589_v4, %s826_s17 }
  0x85   : > { %330 = vrot.lane.b32.xlu0 %v588_v2, %s827_s19  ;;  %332 = vrot.lane.b32.xlu1 %v589_v4, %s827_s19 }
  0x89   : > { %310 = vrot.lane.b32.xlu0 %v587_v3, %s826_s17  ;;  %316 = vrot.lane.b32.xlu1 %v590_v5, %s826_s17 }
  0x8d   : > { %328 = vrot.lane.b32.xlu0 %v587_v3, %s827_s19  ;;  %334 = vrot.lane.b32.xlu1 %v590_v5, %s827_s19 }
  0x91   : > { %348 = vrot.lane.b32.xlu0 %v588_v2, %s829_s24  ;;  %350 = vrot.lane.b32.xlu1 %v589_v4, %s829_s24 }
  0x95   : > { %346 = vrot.lane.b32.xlu0 %v587_v3, %s829_s24  ;;  %352 = vrot.lane.b32.xlu1 %v590_v5, %s829_s24 }
  0xcb   : > { %v223_v9 = vpop.permute.xlu0 %222  ;;  %v221_v10 = vpop.permute.xlu1 %220 }
  0xcc   : > { %v229_v11 = vsel %vm228_vm1, %v221_v10, %v223_v9 }
  0xcd   : > { %235 = vst [vmem:[#allocation2] sm:$0xf0] %v229_v11 }
  0xcf   : > { %v225_v12 = vpop.permute.xlu0 %224  ;;  %v227_v13 = vpop.permute.xlu1 %226 }
  0xd0   : > { %v230_v14 = vsel %vm228_vm1, %v223_v9, %v225_v12  ;;  %v231_v15 = vsel %vm228_vm1, %v225_v12, %v227_v13 }
  0xd1   : > { %236 = vst [vmem:[#allocation2 + $0x8] sm:$0xf0] %v230_v14  ;;  %237 = vst [vmem:[#allocation2 + $0x10] sm:$0xf0] %v231_v15 }
  0xd3   : > { %v241_v16 = vpop.permute.xlu0 %240  ;;  %v243_v17 = vpop.permute.xlu1 %242 }
  0xd4   : > { %v248_v18 = vsel %vm246_vm2, %v241_v16, %v243_v17  ;;  %v365_v24 = vld [vmem:[#allocation2] sm:$0xff] }
  0xd5   : > { %254 = vst [vmem:[#allocation2 + $0x20] sm:$0xf] %v248_v18 }
  0xd7   : > { %v259_v19 = vpop.permute.xlu0 %258  ;;  %v261_v20 = vpop.permute.xlu1 %260 }
  0xd8   : > { %v266_v21 = vsel %vm264_vm3, %v259_v19, %v261_v20  ;;  %v366_v22 = vld [vmem:[#allocation2 + $0x8] sm:$0xff]  ;;  %v367_v23 = vld [vmem:[#allocation2 + $0x10] sm:$0xff] }
  0xd9   : > { %272 = vst [vmem:[#allocation2 + $0x20] sm:$0xf0] %v266_v21  ;;  %384 = vmatprep.subr.bf16.mxu0 %v366_v22  ;;  %604 = vmatpush3.bf16.msra.mxu1 %v367_v23 }
  0xda   : > { %385 = vmatpush1.bf16.msra.mxu0 %v365_v24  ;;  %605 = vmatprep.subr.bf16.mxu1 %v821_v6 }
  0xdb   : > { %v239_v25 = vpop.permute.xlu0 %238  ;;  %v245_v26 = vpop.permute.xlu1 %244 }
  0xdc   : > { %v247_v27 = vsel %vm246_vm2, %v239_v25, %v241_v16  ;;  %v249_v28 = vsel %vm246_vm2, %v243_v17, %v245_v26  ;;  %v364_v17 = vld [vmem:[%s1000_s7] sm:$0xf]  ;;  %s750_s7 = sshll.u32 %s832_s26, 4  ;;  %s751_s7 = int_to_ptr.vmem [resolvable:$false] %s750_s7 }
  0xdd   : > { %253 = vst [vmem:[#allocation2 + $0x18] sm:$0xf] %v247_v27  ;;  %255 = vst [vmem:[#allocation2 + $0x28] sm:$0xf] %v249_v28  ;;  %s752_s14 = scalar_lea.vmem %s751_s7, 768  ;;  %p753_p8 = scmp.lt.s32.totalorder %s1035_s27, %s751_s7 }
  0xde   : > { %p754_p9 = scmp.lt.s32.totalorder %s752_s14, %s746_s3 }
  0xdf   : > { %v257_v29 = vpop.permute.xlu0 %256  ;;  %v263_v30 = vpop.permute.xlu1 %262 }
  0xe0   : > { %v265_v31 = vsel %vm264_vm3, %v257_v29, %v259_v19  ;;  %v267_v32 = vsel %vm264_vm3, %v261_v20, %v263_v30  ;;  %v369_v33 = vld [vmem:[#allocation2 + $0x20] sm:$0xff]  ;;  %p755_p0 = por %p754_p9, %p753_p8 }
  0xe1   : > { %271 = vst [vmem:[#allocation2 + $0x18] sm:$0xf0] %v265_v31  ;;  %273 = vst [vmem:[#allocation2 + $0x28] sm:$0xf0] %v267_v32  ;;  %386 = vmatprep.subr.bf16.mxu0 %v369_v33 }
  0xe2   : > { %p756_p1 = pnand %p755_p0, %p749_p5 }
  0xe3   : > { %v277_v34 = vpop.permute.xlu0 %276  ;;  %v279_v35 = vpop.permute.xlu1 %278 }
  0xe4   : > { %v284_v36 = vsel %vm282_vm4, %v277_v34, %v279_v35 }
  0xe5   : > { %290 = vst [vmem:[#allocation2 + $0x38] sm:$0xf] %v284_v36 }
  0xe7   : > { %v295_v37 = vpop.permute.xlu0 %294  ;;  %v297_v38 = vpop.permute.xlu1 %296 }
  0xe8   : > { %v302_v39 = vsel %vm300_vm5, %v295_v37, %v297_v38  ;;  %v368_v40 = vld [vmem:[#allocation2 + $0x18] sm:$0xff]  ;;  %v370_v41 = vld [vmem:[#allocation2 + $0x28] sm:$0xff] }
  0xe9   : > { %308 = vst [vmem:[#allocation2 + $0x38] sm:$0xf0] %v302_v39  ;;  %387 = vmatpush1.bf16.msra.mxu0 %v368_v40  ;;  %606 = vmatpush3.bf16.msra.mxu1 %v370_v41 }
  0xea   : > { %607 = vmatprep.subr.bf16.mxu1 %v821_v6 }
  0xeb   : > { %v275_v42 = vpop.permute.xlu0 %274  ;;  %v281_v43 = vpop.permute.xlu1 %280 }
  0xec   : > { %v283_v44 = vsel %vm282_vm4, %v275_v42, %v277_v34  ;;  %v285_v45 = vsel %vm282_vm4, %v279_v35, %v281_v43 }
  0xed   : > { %289 = vst [vmem:[#allocation2 + $0x30] sm:$0xf] %v283_v44  ;;  %291 = vst [vmem:[#allocation2 + $0x40] sm:$0xf] %v285_v45 }
  0xef   : > { %v293_v46 = vpop.permute.xlu0 %292  ;;  %v299_v47 = vpop.permute.xlu1 %298 }
  0xf0   : > { %v301_v48 = vsel %vm300_vm5, %v293_v46, %v295_v37  ;;  %v303_v49 = vsel %vm300_vm5, %v297_v38, %v299_v47  ;;  %v372_v50 = vld [vmem:[#allocation2 + $0x38] sm:$0xff] }
  0xf1   : > { %307 = vst [vmem:[#allocation2 + $0x30] sm:$0xf0] %v301_v48  ;;  %309 = vst [vmem:[#allocation2 + $0x40] sm:$0xf0] %v303_v49  ;;  %388 = vmatprep.subr.bf16.mxu0 %v372_v50 }
  0xf3   : > { %v313_v51 = vpop.permute.xlu0 %312  ;;  %v315_v52 = vpop.permute.xlu1 %314 }
  0xf4   : > { %v320_v53 = vsel %vm318_vm6, %v313_v51, %v315_v52 }
  0xf5   : > { %326 = vst [vmem:[#allocation2 + $0x50] sm:$0xf] %v320_v53 }
  0xf7   : > { %v331_v54 = vpop.permute.xlu0 %330  ;;  %v333_v55 = vpop.permute.xlu1 %332 }
  0xf8   : > { %v338_v56 = vsel %vm336_vm7, %v331_v54, %v333_v55  ;;  %v371_v57 = vld [vmem:[#allocation2 + $0x30] sm:$0xff]  ;;  %v373_v58 = vld [vmem:[#allocation2 + $0x40] sm:$0xff] }
  0xf9   : > { %344 = vst [vmem:[#allocation2 + $0x50] sm:$0xf0] %v338_v56  ;;  %389 = vmatpush1.bf16.msra.mxu0 %v371_v57  ;;  %608 = vmatpush3.bf16.msra.mxu1 %v373_v58 }
  0xfa   : > { %609 = vmatprep.subr.bf16.mxu1 %v821_v6 }
  0xfb   : > { %v311_v59 = vpop.permute.xlu0 %310  ;;  %v317_v60 = vpop.permute.xlu1 %316 }
  0xfc   : > { %v319_v61 = vsel %vm318_vm6, %v311_v59, %v313_v51  ;;  %v321_v62 = vsel %vm318_vm6, %v315_v52, %v317_v60 }
  0xfd   : > { %325 = vst [vmem:[#allocation2 + $0x48] sm:$0xf] %v319_v61  ;;  %327 = vst [vmem:[#allocation2 + $0x58] sm:$0xf] %v321_v62 }
  0xff   : > { %v329_v63 = vpop.permute.xlu0 %328  ;;  %v335_v0 = vpop.permute.xlu1 %334 }
 0x100   : > { %v337_v1 = vsel %vm336_vm7, %v329_v63, %v331_v54  ;;  %v339_v2 = vsel %vm336_vm7, %v333_v55, %v335_v0  ;;  %v375_v3 = vld [vmem:[#allocation2 + $0x50] sm:$0xff] }
 0x101   : > { %343 = vst [vmem:[#allocation2 + $0x48] sm:$0xf0] %v337_v1  ;;  %345 = vst [vmem:[#allocation2 + $0x58] sm:$0xf0] %v339_v2  ;;  %390 = vmatprep.subr.bf16.mxu0 %v375_v3 }
 0x103   : > { %v349_v4 = vpop.permute.xlu0 %348  ;;  %v351_v5 = vpop.permute.xlu1 %350 }
 0x104   : > { %v356_v7 = vsel %vm354_vm8, %v349_v4, %v351_v5 }
 0x105   : > { %362 = vst [vmem:[#allocation2 + $0x68] sm:$0xf] %v356_v7 }
 0x107   : > { %v347_v8 = vpop.permute.xlu0 %346  ;;  %v353_v9 = vpop.permute.xlu1 %352 }
 0x108   : > { %v355_v10 = vsel %vm354_vm8, %v347_v8, %v349_v4  ;;  %v357_v11 = vsel %vm354_vm8, %v351_v5, %v353_v9  ;;  %v374_v12 = vld [vmem:[#allocation2 + $0x48] sm:$0xff]  ;;  %v376_v13 = vld [vmem:[#allocation2 + $0x58] sm:$0xff] }
 0x109   : > { %361 = vst [vmem:[#allocation2 + $0x60] sm:$0xf] %v355_v10  ;;  %363 = vst [vmem:[#allocation2 + $0x70] sm:$0xf] %v357_v11  ;;  %391 = vmatpush1.bf16.msra.mxu0 %v374_v12  ;;  %610 = vmatpush3.bf16.msra.mxu1 %v376_v13 }
 0x10a   : > { %611 = vmatprep.subr.bf16.mxu1 %v821_v6 }
 0x10c   : > { %v378_v14 = vld [vmem:[#allocation2 + $0x68] sm:$0xff] }
 0x10d   : > { %392 = vmatprep.subr.bf16.mxu0 %v378_v14 }
 0x110   : > { %v377_v15 = vld [vmem:[#allocation2 + $0x60] sm:$0xff]  ;;  %v379_v16 = vld [vmem:[#allocation2 + $0x70] sm:$0xff] }
 0x111   : > { %393 = vmatpush1.bf16.msra.mxu0 %v377_v15  ;;  %612 = vmatpush3.bf16.msra.mxu1 %v379_v16 }
 0x114   : > { %591 = vmatmul.mubr.msk.bf16.vlgmr.msra.gmra.mrb[0].mxu0 %vm318_vm6, %v364_v17  ;;  %614 = vmatmul.mubr.msk.bf16.vlgmr.msra.gmra.mrb[0].mxu1 %vm318_vm6, %v364_v17 }
 0x1e7   : > { %v418_v6 = vpop.f32.mrb[0].mxu0  ;;  %v459_v18 = vpop.f32.mrb[0].mxu1 }
 0x1e8   : > { %465 = vst [vmem:[%s196_s25] sm:$0xff] %v418_v6  ;;  %467 = vst [vmem:[%s196_s25 + $0x10] sm:$0xff] %v459_v18  ;;  %v420_v19 = vpop.f32.mrb[1].mxu0  ;;  %v615_v20 = vpop.f32.mrb[1].mxu1 }
 0x1e9   : > { %466 = vst [vmem:[%s196_s25 + $0x8] sm:$0xff] %v420_v19  ;;  %v422_v21 = vpop.f32.mrb[2].mxu0  ;;  %v462_v22 = vpop.f32.mrb[2].mxu1 }
 0x1ea   : > { %v423_v23 = vpop.f32.mrb[3].mxu0  ;;  %v616_v24 = vpop.f32.mrb[3].mxu1 }
 0x1eb   : > { %759 = shalt.err (!%p756_p1)
}
 0x1ec   : > { %s760_s5 = scalar_lea.hbm %s1040_s30, 384  ;;  %s764_s4 = scalar_lea.hbm %s1084_s2, 768 }
 0x1ed   : > { %p761_p11 = scmp.ne.s32.totalorder %s1040_s30, %s760_s5  ;;  %p765_p4 = scmp.lt.u32.totalorder %s1040_s30, %s1084_s2 }
 0x1ee   : > { %p766_p10 = scmp.lt.u32.totalorder %s764_s4, %s760_s5  ;;  %p768_p6 = scmp.lt.u32.totalorder %s760_s5, %s1040_s30 }
 0x1ef   : > { %p762_p12 = pnand %p761_p11, %p1097_p13 }
 0x1f0   : > { %p767_p3 = por %p766_p10, %p765_p4 }
 0x1f1   : > { %p763_p2 = pneg %p762_p12 }
 0x1f2   : > { %p769_p7 = por %p768_p6, %p767_p3 }
 0x1f4   : > { %p770_p5 = pnand %p769_p7, %p763_p2 }
 0x1f6   : > { %773 = shalt.err (!%p770_p5)
}
 0x1f7   : > { %623 = dma.vmem_to_hbm [thread:$0]  (%p1097_p13), %s1035_s27, 384, %s1040_s30, %s469_s13  }
 0x1f8 PF: > { %s495_s19 = sand.u32 1, %s804_s9   ;;  %p1098_p8 = scmp.ne.s32.totalorder %s1090_s22, 0 }
 0x1f9   : > { %p1099_p9 = scmp.ge.s32.totalorder %s816_s12, 2  ;;  %s496_s24 = scalar_lea.sflag [#allocation5], %s495_s19 }
 0x1fb   : > { %p633_p0 = pnand %p1099_p9, %p1098_p8 }
 0x1fd   : > { %799 = dma.done.wait (!%p633_p0), %s496_s24, 384  }
 0x1fe   : > { %801 = vsyncadd (!%p633_p0), %s496_s24, 4294966912  ;;  %p18_p1 = scmp.ge.s32.totalorder %s873_s15, 4   ;;  %s1100_s9 = smov %s808_s10 }
 0x1ff   : > { %s1101_s10 = smov %s812_s11  ;;  %s1102_s11 = smov %s885_s18 }
 0x200   : > { %s1103_s12 = smov %s873_s15  ;;  %20 = sbr.rel (!%p18_p1) target bundleno = 7 (0x7), region = 86 }
 0x207   :  { %501 = vsyncpa [#allocation4], 1 }
 0x208   :  { %503 = vsyncpa [#allocation4 + $0x1], 1 }
 0x209   :  { %504 = vsyncpa [#allocation7], 1 }
 0x20a   :  { %506 = vsyncpa [#allocation7 + $0x1], 1 }
 0x20b   :  { %507 = vsyncpa [#allocation5], 1 }
 0x20c   :  { %509 = vsyncpa [#allocation5 + $0x1], 1 }

</bundles_post_ra>
